<compile_context>
chip_gen: v5e
topology: v5e:2x2
jax: 0.10.0
libtpu: 0.0.40
codegen_flags: <defaults>
</compile_context>

<pallas_src>
import jax
import jax.numpy as jnp
from jax.experimental import pallas as pl
from jax.experimental.pallas import tpu as pltpu


def autoencoder_kernel(w1_ref, b1_ref, w2_ref, b2_ref, x_ref, out_ref):
    """relu(W2 @ relu(W1 @ X + b1) + b2) on a (3, tile_nb, 128) batch tile.

    w1_ref: (2, 3) SMEM, b1_ref: (2,) SMEM   (PyTorch layout: out x in)
    w2_ref: (3, 2) SMEM, b2_ref: (3,) SMEM
    x_ref : (3, tile_nb, 128) VMEM, out_ref: (3, tile_nb, 128) VMEM
    """
    # Feature rows, each a fully packed (tile_nb, 128) slab -> full vreg use.
    x0 = x_ref[0]
    x1 = x_ref[1]
    x2 = x_ref[2]

    # Encoder: h_j = relu(sum_k w1[j, k] * x_k + b1[j]),  j in {0, 1}
    h0 = jnp.maximum(
        w1_ref[0, 0] * x0 + w1_ref[0, 1] * x1 + w1_ref[0, 2] * x2 + b1_ref[0], 0.0)
    h1 = jnp.maximum(
        w1_ref[1, 0] * x0 + w1_ref[1, 1] * x1 + w1_ref[1, 2] * x2 + b1_ref[1], 0.0)

    # Decoder: y_i = relu(sum_j w2[i, j] * h_j + b2[i]) -- stored row by row,
    # no concatenate temporary.
    out_ref[0] = jnp.maximum(w2_ref[0, 0] * h0 + w2_ref[0, 1] * h1 + b2_ref[0], 0.0)
    out_ref[1] = jnp.maximum(w2_ref[1, 0] * h0 + w2_ref[1, 1] * h1 + b2_ref[1], 0.0)
    out_ref[2] = jnp.maximum(w2_ref[2, 0] * h0 + w2_ref[2, 1] * h1 + b2_ref[2], 0.0)


def autoencoder_forward(x, w1, b1, w2, b2, *, tile_nb=1024):
    """x: (B, 3) f32. w1: (2, 3), b1: (2,), w2: (3, 2), b2: (3,) — PyTorch layout.

    Returns (B, 3) f32, matching AutoEncoder.forward.
    tile_nb: number of 128-wide batch groups per grid step (1024 -> 1.5 MiB
    input block; raise to 2048-4096 on v6e/v7x for very large B).
    """
    x = jnp.asarray(x, jnp.float32)
    w1 = jnp.asarray(w1, jnp.float32)
    b1 = jnp.asarray(b1, jnp.float32)
    w2 = jnp.asarray(w2, jnp.float32)
    b2 = jnp.asarray(b2, jnp.float32)

    B = x.shape[0]
    # Sublane-packed, feature-major view: (B, 3) -> (3, nb, 128).
    # Pad only to the next multiple of 128 (cheap); no padding to tile multiples.
    b128 = pl.cdiv(B, 128) * 128
    nb = b128 // 128
    xt = jnp.transpose(x, (1, 0))                   # (3, B)
    xt = jnp.pad(xt, ((0, 0), (0, b128 - B)))       # (3, b128)
    xt = xt.reshape(3, nb, 128)                     # (3, nb, 128)

    # Effective tile along the nb axis: multiple of 8 (sublane quantum) when it
    # tiles the array, or the full extent when a single block covers everything.
    if tile_nb >= nb:
        tile_nb_eff = nb
    else:
        tile_nb_eff = max(8, (tile_nb // 8) * 8)
        if tile_nb_eff >= nb:
            tile_nb_eff = nb
    grid = (pl.cdiv(nb, tile_nb_eff),)

    smem = pl.BlockSpec(memory_space=pltpu.MemorySpace.SMEM)  # tiny resident params
    out_t = pl.pallas_call(
        autoencoder_kernel,
        out_shape=jax.ShapeDtypeStruct((3, nb, 128), jnp.float32),
        grid=grid,
        in_specs=[
            smem,  # w1 (2, 3)
            smem,  # b1 (2,)
            smem,  # w2 (3, 2)
            smem,  # b2 (3,)
            pl.BlockSpec((3, tile_nb_eff, 128), lambda i: (0, i, 0)),
        ],
        out_specs=pl.BlockSpec((3, tile_nb_eff, 128), lambda i: (0, i, 0)),
        compiler_params=pltpu.CompilerParams(
            # Batch tiles are independent -> shard across TCs on v7x megacore.
            dimension_semantics=("parallel",),
            vmem_limit_bytes=32 * 1024 * 1024,
        ),
    )(w1, b1, w2, b2, xt)

    # Drop the <128-element pad and return in the caller's (B, 3) layout.
    return out_t.reshape(3, b128)[:, :B].T


def _reference_forward(x, w1, b1, w2, b2):
    """Pure-JAX reference matching PyTorch semantics (y = x @ W.T + b)."""
    h = jnp.maximum(x @ w1.T + b1, 0.0)
    return jnp.maximum(h @ w2.T + b2, 0.0)


if __name__ == "__main__":
    key = jax.random.PRNGKey(0)
    k_x, k_w1, k_b1, k_w2, k_b2 = jax.random.split(key, 5)

    # Non-multiple-of-128 batch: exercises the minimal pad, the sublane repack
    # (nb = 10 groups of 128), and a 2-step grid with a partial tail block.
    B = 1200
    x = jax.random.normal(k_x, (B, 3), dtype=jnp.float32)

    # Deterministic parameter init (PyTorch-Linear-style uniform bounds).
    bound1 = 1.0 / jnp.sqrt(3.0)  # fan_in = 3
    w1 = jax.random.uniform(k_w1, (2, 3), jnp.float32, -bound1, bound1)
    b1 = jax.random.uniform(k_b1, (2,), jnp.float32, -bound1, bound1)
    bound2 = 1.0 / jnp.sqrt(2.0)  # fan_in = 2
    w2 = jax.random.uniform(k_w2, (3, 2), jnp.float32, -bound2, bound2)
    b2 = jax.random.uniform(k_b2, (3,), jnp.float32, -bound2, bound2)

    ref = _reference_forward(x, w1, b1, w2, b2)

    # Small tile -> 2-step grid (nb=10, tile_nb_eff=8, partial tail block).
    out = autoencoder_forward(x, w1, b1, w2, b2, tile_nb=8)
    out = jax.block_until_ready(out)
    assert out.shape == (B, 3)
    assert jnp.allclose(out, ref, atol=1e-5, rtol=1e-5)

    # Default roofline-sized tile -> single block covers the whole (small) batch.
    out2 = jax.block_until_ready(autoencoder_forward(x, w1, b1, w2, b2))
    assert jnp.allclose(out2, ref, atol=1e-5, rtol=1e-5)

    print("KERNEL_OK")
</pallas_src>

<mosaic_0001>
module attributes {stable_mosaic.version = 11 : i64} {
  func.func @autoencoder_kernel(%arg0: i32, %arg1: memref<2x3xf32, #tpu.memory_space<smem>>, %arg2: memref<2xf32, #tpu.memory_space<smem>>, %arg3: memref<3x2xf32, #tpu.memory_space<smem>>, %arg4: memref<3xf32, #tpu.memory_space<smem>>, %arg5: memref<3x8x128xf32, #tpu.memory_space<vmem>>, %arg6: memref<3x8x128xf32, #tpu.memory_space<vmem>>) attributes {dimension_semantics = [#tpu.dimension_semantics<parallel>], iteration_bounds = array<i64: 2>, scalar_prefetch = 0 : i64, scratch_operands = 0 : i64, tpu.core_type = #tpu.core_type<tc>, window_params = [{transform_indices = @transform_0, window_bounds = array<i64: 2, 3>}, {transform_indices = @transform_1, window_bounds = array<i64: 2>}, {transform_indices = @transform_2, window_bounds = array<i64: 3, 2>}, {transform_indices = @transform_3, window_bounds = array<i64: 3>}, {transform_indices = @transform_4, window_bounds = array<i64: 3, 8, 128>}, {transform_indices = @transform_5, window_bounds = array<i64: 3, 8, 128>}]} {
    %c0 = arith.constant 0 : index
    %c0_0 = arith.constant 0 : index
    %c0_1 = arith.constant 0 : index
    %0 = vector.load %arg5[%c0, %c0_0, %c0_1] : memref<3x8x128xf32, #tpu.memory_space<vmem>>, vector<1x8x128xf32>
    %1 = vector.shape_cast %0 : vector<1x8x128xf32> to vector<8x128xf32>
    %c1 = arith.constant 1 : index
    %c0_2 = arith.constant 0 : index
    %c0_3 = arith.constant 0 : index
    %2 = vector.load %arg5[%c1, %c0_2, %c0_3] : memref<3x8x128xf32, #tpu.memory_space<vmem>>, vector<1x8x128xf32>
    %3 = vector.shape_cast %2 : vector<1x8x128xf32> to vector<8x128xf32>
    %c2 = arith.constant 2 : index
    %c0_4 = arith.constant 0 : index
    %c0_5 = arith.constant 0 : index
    %4 = vector.load %arg5[%c2, %c0_4, %c0_5] : memref<3x8x128xf32, #tpu.memory_space<vmem>>, vector<1x8x128xf32>
    %5 = vector.shape_cast %4 : vector<1x8x128xf32> to vector<8x128xf32>
    %c0_6 = arith.constant 0 : index
    %c0_7 = arith.constant 0 : index
    %6 = memref.load %arg1[%c0_6, %c0_7] : memref<2x3xf32, #tpu.memory_space<smem>>
    %7 = vector.broadcast %6 : f32 to vector<8x128xf32>
    %8 = arith.mulf %7, %1 : vector<8x128xf32>
    %c0_8 = arith.constant 0 : index
    %c1_9 = arith.constant 1 : index
    %9 = memref.load %arg1[%c0_8, %c1_9] : memref<2x3xf32, #tpu.memory_space<smem>>
    %10 = vector.broadcast %9 : f32 to vector<8x128xf32>
    %11 = arith.mulf %10, %3 : vector<8x128xf32>
    %12 = arith.addf %8, %11 : vector<8x128xf32>
    %c0_10 = arith.constant 0 : index
    %c2_11 = arith.constant 2 : index
    %13 = memref.load %arg1[%c0_10, %c2_11] : memref<2x3xf32, #tpu.memory_space<smem>>
    %14 = vector.broadcast %13 : f32 to vector<8x128xf32>
    %15 = arith.mulf %14, %5 : vector<8x128xf32>
    %16 = arith.addf %12, %15 : vector<8x128xf32>
    %c0_12 = arith.constant 0 : index
    %17 = memref.load %arg2[%c0_12] : memref<2xf32, #tpu.memory_space<smem>>
    %18 = vector.broadcast %17 : f32 to vector<8x128xf32>
    %19 = arith.addf %16, %18 : vector<8x128xf32>
    %cst = arith.constant 0.000000e+00 : f32
    %20 = vector.broadcast %cst : f32 to vector<8x128xf32>
    %21 = arith.maximumf %19, %20 : vector<8x128xf32>
    %c1_13 = arith.constant 1 : index
    %c0_14 = arith.constant 0 : index
    %22 = memref.load %arg1[%c1_13, %c0_14] : memref<2x3xf32, #tpu.memory_space<smem>>
    %23 = vector.broadcast %22 : f32 to vector<8x128xf32>
    %24 = arith.mulf %23, %1 : vector<8x128xf32>
    %c1_15 = arith.constant 1 : index
    %c1_16 = arith.constant 1 : index
    %25 = memref.load %arg1[%c1_15, %c1_16] : memref<2x3xf32, #tpu.memory_space<smem>>
    %26 = vector.broadcast %25 : f32 to vector<8x128xf32>
    %27 = arith.mulf %26, %3 : vector<8x128xf32>
    %28 = arith.addf %24, %27 : vector<8x128xf32>
    %c1_17 = arith.constant 1 : index
    %c2_18 = arith.constant 2 : index
    %29 = memref.load %arg1[%c1_17, %c2_18] : memref<2x3xf32, #tpu.memory_space<smem>>
    %30 = vector.broadcast %29 : f32 to vector<8x128xf32>
    %31 = arith.mulf %30, %5 : vector<8x128xf32>
    %32 = arith.addf %28, %31 : vector<8x128xf32>
    %c1_19 = arith.constant 1 : index
    %33 = memref.load %arg2[%c1_19] : memref<2xf32, #tpu.memory_space<smem>>
    %34 = vector.broadcast %33 : f32 to vector<8x128xf32>
    %35 = arith.addf %32, %34 : vector<8x128xf32>
    %cst_20 = arith.constant 0.000000e+00 : f32
    %36 = vector.broadcast %cst_20 : f32 to vector<8x128xf32>
    %37 = arith.maximumf %35, %36 : vector<8x128xf32>
    %c0_21 = arith.constant 0 : index
    %c0_22 = arith.constant 0 : index
    %38 = memref.load %arg3[%c0_21, %c0_22] : memref<3x2xf32, #tpu.memory_space<smem>>
    %39 = vector.broadcast %38 : f32 to vector<8x128xf32>
    %40 = arith.mulf %39, %21 : vector<8x128xf32>
    %c0_23 = arith.constant 0 : index
    %c1_24 = arith.constant 1 : index
    %41 = memref.load %arg3[%c0_23, %c1_24] : memref<3x2xf32, #tpu.memory_space<smem>>
    %42 = vector.broadcast %41 : f32 to vector<8x128xf32>
    %43 = arith.mulf %42, %37 : vector<8x128xf32>
    %44 = arith.addf %40, %43 : vector<8x128xf32>
    %c0_25 = arith.constant 0 : index
    %45 = memref.load %arg4[%c0_25] : memref<3xf32, #tpu.memory_space<smem>>
    %46 = vector.broadcast %45 : f32 to vector<8x128xf32>
    %47 = arith.addf %44, %46 : vector<8x128xf32>
    %cst_26 = arith.constant 0.000000e+00 : f32
    %48 = vector.broadcast %cst_26 : f32 to vector<8x128xf32>
    %49 = arith.maximumf %47, %48 : vector<8x128xf32>
    %c0_27 = arith.constant 0 : index
    %c0_28 = arith.constant 0 : index
    %c0_29 = arith.constant 0 : index
    %50 = vector.load %arg6[%c0_27, %c0_28, %c0_29] : memref<3x8x128xf32, #tpu.memory_space<vmem>>, vector<1x8x128xf32>
    %51 = vector.shape_cast %50 : vector<1x8x128xf32> to vector<8x128xf32>
    %52 = vector.shape_cast %49 : vector<8x128xf32> to vector<1x8x128xf32>
    tpu.vector_store %arg6[%c0_27, %c0_28, %c0_29], %52 {strides = array<i32>} : memref<3x8x128xf32, #tpu.memory_space<vmem>>, vector<1x8x128xf32>,
    %c1_30 = arith.constant 1 : index
    %c0_31 = arith.constant 0 : index
    %53 = memref.load %arg3[%c1_30, %c0_31] : memref<3x2xf32, #tpu.memory_space<smem>>
    %54 = vector.broadcast %53 : f32 to vector<8x128xf32>
    %55 = arith.mulf %54, %21 : vector<8x128xf32>
    %c1_32 = arith.constant 1 : index
    %c1_33 = arith.constant 1 : index
    %56 = memref.load %arg3[%c1_32, %c1_33] : memref<3x2xf32, #tpu.memory_space<smem>>
    %57 = vector.broadcast %56 : f32 to vector<8x128xf32>
    %58 = arith.mulf %57, %37 : vector<8x128xf32>
    %59 = arith.addf %55, %58 : vector<8x128xf32>
    %c1_34 = arith.constant 1 : index
    %60 = memref.load %arg4[%c1_34] : memref<3xf32, #tpu.memory_space<smem>>
    %61 = vector.broadcast %60 : f32 to vector<8x128xf32>
    %62 = arith.addf %59, %61 : vector<8x128xf32>
    %cst_35 = arith.constant 0.000000e+00 : f32
    %63 = vector.broadcast %cst_35 : f32 to vector<8x128xf32>
    %64 = arith.maximumf %62, %63 : vector<8x128xf32>
    %c1_36 = arith.constant 1 : index
    %c0_37 = arith.constant 0 : index
    %c0_38 = arith.constant 0 : index
    %65 = vector.load %arg6[%c1_36, %c0_37, %c0_38] : memref<3x8x128xf32, #tpu.memory_space<vmem>>, vector<1x8x128xf32>
    %66 = vector.shape_cast %65 : vector<1x8x128xf32> to vector<8x128xf32>
    %67 = vector.shape_cast %64 : vector<8x128xf32> to vector<1x8x128xf32>
    tpu.vector_store %arg6[%c1_36, %c0_37, %c0_38], %67 {strides = array<i32>} : memref<3x8x128xf32, #tpu.memory_space<vmem>>, vector<1x8x128xf32>,
    %c2_39 = arith.constant 2 : index
    %c0_40 = arith.constant 0 : index
    %68 = memref.load %arg3[%c2_39, %c0_40] : memref<3x2xf32, #tpu.memory_space<smem>>
    %69 = vector.broadcast %68 : f32 to vector<8x128xf32>
    %70 = arith.mulf %69, %21 : vector<8x128xf32>
    %c2_41 = arith.constant 2 : index
    %c1_42 = arith.constant 1 : index
    %71 = memref.load %arg3[%c2_41, %c1_42] : memref<3x2xf32, #tpu.memory_space<smem>>
    %72 = vector.broadcast %71 : f32 to vector<8x128xf32>
    %73 = arith.mulf %72, %37 : vector<8x128xf32>
    %74 = arith.addf %70, %73 : vector<8x128xf32>
    %c2_43 = arith.constant 2 : index
    %75 = memref.load %arg4[%c2_43] : memref<3xf32, #tpu.memory_space<smem>>
    %76 = vector.broadcast %75 : f32 to vector<8x128xf32>
    %77 = arith.addf %74, %76 : vector<8x128xf32>
    %cst_44 = arith.constant 0.000000e+00 : f32
    %78 = vector.broadcast %cst_44 : f32 to vector<8x128xf32>
    %79 = arith.maximumf %77, %78 : vector<8x128xf32>
    %c2_45 = arith.constant 2 : index
    %c0_46 = arith.constant 0 : index
    %c0_47 = arith.constant 0 : index
    %80 = vector.load %arg6[%c2_45, %c0_46, %c0_47] : memref<3x8x128xf32, #tpu.memory_space<vmem>>, vector<1x8x128xf32>
    %81 = vector.shape_cast %80 : vector<1x8x128xf32> to vector<8x128xf32>
    %82 = vector.shape_cast %79 : vector<8x128xf32> to vector<1x8x128xf32>
    tpu.vector_store %arg6[%c2_45, %c0_46, %c0_47], %82 {strides = array<i32>} : memref<3x8x128xf32, #tpu.memory_space<vmem>>, vector<1x8x128xf32>,
    return
  }
  func.func @transform_0(%arg0: i32) -> (i32, i32) {
    %c0_i32 = arith.constant 0 : i32
    %c0_i32_0 = arith.constant 0 : i32
    %c0_i32_1 = arith.constant 0 : i32
    return %c0_i32, %c0_i32_0 : i32, i32
  }
  func.func @transform_1(%arg0: i32) -> i32 {
    %c0_i32 = arith.constant 0 : i32
    %c0_i32_0 = arith.constant 0 : i32
    return %c0_i32 : i32
  }
  func.func @transform_2(%arg0: i32) -> (i32, i32) {
    %c0_i32 = arith.constant 0 : i32
    %c0_i32_0 = arith.constant 0 : i32
    %c0_i32_1 = arith.constant 0 : i32
    return %c0_i32, %c0_i32_0 : i32, i32
  }
  func.func @transform_3(%arg0: i32) -> i32 {
    %c0_i32 = arith.constant 0 : i32
    %c0_i32_0 = arith.constant 0 : i32
    return %c0_i32 : i32
  }
  func.func @transform_4(%arg0: i32) -> (i32, i32, i32) {
    %c0_i32 = arith.constant 0 : i32
    %c0_i32_0 = arith.constant 0 : i32
    %c0_i32_1 = arith.constant 0 : i32
    return %c0_i32, %arg0, %c0_i32_0 : i32, i32, i32
  }
  func.func @transform_5(%arg0: i32) -> (i32, i32, i32) {
    %c0_i32 = arith.constant 0 : i32
    %c0_i32_0 = arith.constant 0 : i32
    %c0_i32_1 = arith.constant 0 : i32
    return %c0_i32, %arg0, %c0_i32_0 : i32, i32, i32
  }
}

</mosaic_0001>

<bundles_post_ra>
// kernel: tpu_custom_call.1
= control target key start
LH: loop header
LB: loop body
LE: loop exit
PB: predicated region body
PF: predicated region fallthrough
CT: control target
= control target key end

     0   :  { %10 = vsyncpa [#allocation3], 0  ;;  %s876_s0 = inlined_call_operand.vmem [shape: f32[2,3], index: 0, kind: input, shape index: {}]   ;;  %s877_s1 = inlined_call_operand.vmem [shape: f32[2], index: 1, kind: input, shape index: {}]   ;;  %s878_s2 = inlined_call_operand.vmem [shape: f32[3,2], index: 2, kind: input, shape index: {}]   ;;  %s879_s3 = inlined_call_operand.vmem [shape: f32[3], index: 3, kind: input, shape index: {}]   ;;  %s880_s4 = inlined_call_operand.vmem [shape: f32[3,10,128], index: 4, kind: input, shape index: {}]   ;;  %s881_s5 = inlined_call_operand.vmem [shape: f32[3,10,128], index: 5, kind: output, shape index: {}]  }
   0x1   :  { %11 = vsyncpa [#allocation5], 0 }
   0x2   :  { %12 = vsyncpa [#allocation8], 0  ;;  %s765_s18 = smov 0   ;;  %s767_s19 = smov 0  }
   0x3   :  { %s769_s20 = smov 0  }
   0x4 LB: > { %s781_s21 = sadd.s32 4294967295, %s729_s20   ;;  %s784_s22 = sadd.s32 1, %s729_s20   ;;  %s729_s20 = sphi %s769_s20, %s887_s20   ;;  %s725_s19 = sphi %s767_s19, %s886_s19   ;;  %s721_s18 = sphi %s765_s18, %s885_s18  }
   0x5   : > { %s106_s23 = ssub.s32 %s729_s20, %s784_s22  ;;  %s109_s24 = sadd.s32 1, %s725_s19 }
   0x6   : > { %p107_p0 = scmp.eq.s32.totalorder %s106_s23, 0  ;;  %p116_p1 = scmp.ne.s32.totalorder %s725_s19, %s721_s18 }
   0x7   : > { %p117_p2 = scmp.eq.s32.totalorder %s729_s20, 0  ;;  %p146_p3 = scmp.eq.s32.totalorder %s781_s21, 1 }
   0x8   : > { %s794_s25 = scalar_select %p107_p0, %s725_s19, %s109_s24  }
   0x9   : > { %p796_p4 = por %p117_p2, %p116_p1  ;;  %p800_p5 = por %p146_p3, %p116_p1 }
   0xa   : > { %p536_p6 = scmp.ge.s32.totalorder %s729_s20, 1  ;;  %p159_p7 = scmp.lt.s32.totalorder %s729_s20, 3 }
   0xb   : > { %p599_p8 = scmp.eq.s32.totalorder %s781_s21, 0  ;;  %s181_s6 = sshll.u32 %s877_s1, 4  ;;  %s182_s6 = int_to_ptr.vmem [resolvable:$true] %s181_s6 }
   0xc   : > { %p807_p9 = pnand %p536_p6, %p159_p7  ;;  %s171_s9 = sshll.u32 %s876_s0, 4  ;;  %s172_s9 = int_to_ptr.vmem [resolvable:$true] %s171_s9 }
   0xd   : > { %s191_s12 = sshll.u32 %s878_s2, 4  ;;  %s201_s15 = sshll.u32 %s879_s3, 4  ;;  %s192_s12 = int_to_ptr.vmem [resolvable:$true] %s191_s12  ;;  %s202_s15 = int_to_ptr.vmem [resolvable:$true] %s201_s15 }
   0xe   : > { %p586_p10 = pneg %p807_p9  ;;  %s731_s16 = smov [#allocation4]  }
   0xf   : > { %s732_s17 = smov [#allocation2]   ;;  %s733_s23 = smov [#allocation6]  }
  0x10   : > { %p587_p11 = pnand %p599_p8, %p586_p10  ;;  %s734_s24 = smov [#allocation7]  }
  0x11   : > { %p541_p12 = scmp.ge.s32.totalorder %s729_s20, 2 }
  0x12   : > { %592 = dma.vmem_to_smem (!%p587_p11), %s182_s6, 16, %s731_s16, [#allocation5]  }
  0x13   : > { %589 = dma.vmem_to_smem (!%p587_p11), %s172_s9, 32, %s732_s17, [#allocation3]  }
  0x14   : > { %595 = dma.vmem_to_smem (!%p587_p11), %s192_s12, 64, %s733_s23, [#allocation5]  }
  0x15   : > { %598 = dma.vmem_to_smem (!%p587_p11), %s202_s15, 16, %s734_s24, [#allocation8]  }
  0x16   : > { %208 = sbr.rel (%p541_p12) target bundleno = 34 (0x22), region = 32 }
  0x1b   : > { %211 = sbr.rel (!%p796_p4) target bundleno = 34 (0x22), region = 36  ;;  %s213_s29 = sand.u32 (%p796_p4), 1, %s725_s19  }
  0x1c   : > { %s542_s30 = sshll.u32 (%p796_p4), %s729_s20, 3  ;;  %s568_s7 = smul.u32 (%p796_p4), 24, %s213_s29 }
  0x1d   : > { %s217_s9 = scalar_lea.vmem (%p796_p4), %s880_s4, %s542_s30 }
  0x1e   : > { %v250_v0 = vld [vmem:[%s217_s9] sm:$0xff] (%p796_p4)  ;;  %v252_v1 = vld [vmem:[%s217_s9 + $0x10] sm:$0xff] (%p796_p4)  ;;  %s215_s10 = scalar_lea.vmem (%p796_p4), [#allocation9], %s568_s7 }
  0x1f   : > { %v254_v2 = vld [vmem:[%s217_s9 + $0x20] sm:$0xff] (%p796_p4)  ;;  %251 = vst [vmem:[%s215_s10] sm:$0xff] (%p796_p4), %v250_v0 }
  0x20   : > { %253 = vst [vmem:[%s215_s10 + $0x8] sm:$0xff] %v252_v1 }
  0x21   : > { %255 = vst [vmem:[%s215_s10 + $0x10] sm:$0xff] %v254_v2 }
  0x22 PF: > { %264 = sbr.rel (%p807_p9) target bundleno = 90 (0x5a), region = 74 }
  0x27   : > { %708 = dma.done.wait (%p599_p8), [#allocation3], 32  }
  0x28   : > { %710 = vsyncadd (%p599_p8), [#allocation3], 4294967264 }
  0x29   : > { %712 = dma.done.wait (%p599_p8), [#allocation5], 80  }
  0x2a   : > { %714 = vsyncadd (%p599_p8), [#allocation5], 4294967216 }
  0x2b   : > { %716 = dma.done.wait (%p599_p8), [#allocation8], 16  }
  0x2c   : > { %718 = vsyncadd (%p599_p8), [#allocation8], 4294967280  ;;  %s287_s20 = sand.u32 1, %s721_s18  }
  0x2d   : > { %s850_s26 = smul.u32 24, %s287_s20 }
  0x2f   : > { %s289_s28 = scalar_lea.vmem [#allocation9], %s850_s26 }
  0x30   : > { %293 = sfence }
  0x31   : > { %s319_s11 = sld [smem:[#allocation2]]  ;;  %v314_v3 = vld [vmem:[%s289_s28] sm:$0xff]  ;;  %v548_v4 = vld [vmem:[%s289_s28 + $0x8] sm:$0xff]  ;;  %v549_v5 = vld [vmem:[%s289_s28 + $0x10] sm:$0xff]  ;;  %s313_s20 = scalar_lea.vmem [#allocation10], %s850_s26 }
  0x32   : > { %s550_s12 = sld [smem:[#allocation2 + $0x1]]  ;;  %s565_s28 = sshll.u32 (%p800_p5), %s781_s21, 3 }
  0x33   : > { %s551_s13 = sld [smem:[#allocation2 + $0x2]] }
  0x34   : > { %s330_s14 = sld [smem:[#allocation4]] }
  0x35   : > { %s552_s15 = sld [smem:[#allocation2 + $0x80]] }
  0x36   : > { %s553_s16 = sld [smem:[#allocation2 + $0x81]] }
  0x37   : > { %v320_v6 = vstv %s319_s11  ;;  %s554_s17 = sld [smem:[#allocation2 + $0x82]] }
  0x38   : > { %v321_v7 = vmul.f32 %v320_v6, %v314_v3  ;;  %v323_v8 = vstv %s550_s12  ;;  %s555_s23 = sld [smem:[#allocation4 + $0x1]] }
  0x39   : > { %v324_v9 = vmul.f32 %v548_v4, %v323_v8  ;;  %v327_v10 = vstv %s551_s13  ;;  %s349_s18 = sld [smem:[#allocation6]]  ;;  %s395_s13 = scalar_lea.vmem (%p800_p5), %s881_s5, %s565_s28 }
  0x3a   : > { %v328_v11 = vmul.f32 %v549_v5, %v327_v10  ;;  %s853_s24 = sld [smem:[#allocation6 + $0x1]]  ;;  %v331_v14 = vstv %s330_s14 }
  0x3b   : > { %v325_v12 = vadd.f32 %v324_v9, %v321_v7  ;;  %v335_v13 = vstv %s552_s15  ;;  %s855_s29 = sld [smem:[#allocation7]] }
  0x3c   : > { %v336_v15 = vmul.f32 %v335_v13, %v314_v3  ;;  %v338_v16 = vstv %s553_s16  ;;  %s557_s30 = sld [smem:[#allocation6 + $0x80]] }
  0x3d   : > { %v329_v17 = vadd.f32 %v328_v11, %v325_v12  ;;  %v339_v18 = vmul.f32 %v548_v4, %v338_v16  ;;  %v342_v19 = vstv %s554_s17  ;;  %s558_s7 = sld [smem:[#allocation6 + $0x81]] }
  0x3e   : > { %v343_v20 = vmul.f32 %v549_v5, %v342_v19  ;;  %s559_s8 = sld [smem:[#allocation7 + $0x1]]  ;;  %v346_v23 = vstv %s555_s23 }
  0x3f   : > { %v332_v21 = vadd.f32 %v331_v14, %v329_v17  ;;  %v340_v22 = vadd.f32 %v339_v18, %v336_v15  ;;  %s561_s6 = sld [smem:[#allocation6 + $0x100]]  ;;  %v350_v26 = vstv %s349_s18 }
  0x40   : > { %s562_s9 = sld [smem:[#allocation6 + $0x101]]  ;;  %v353_v29 = vstv %s853_s24 }
  0x41   : > { %v333_v24 = vmax.f32 %v332_v21, 0.0  ;;  %v344_v25 = vadd.f32 %v343_v20, %v340_v22  ;;  %s563_s10 = sld [smem:[#allocation7 + $0x2]]  ;;  %v357_v40 = vstv %s855_s29 }
  0x42   : > { %v362_v27 = vstv %s557_s30 }
  0x43   : > { %v347_v28 = vadd.f32 %v346_v23, %v344_v25  ;;  %v365_v30 = vstv %s558_s7  ;;  %v351_v32 = vmul.f32 %v350_v26, %v333_v24  ;;  %v363_v33 = vmul.f32 %v362_v27, %v333_v24 }
  0x44   : > { %v369_v41 = vstv %s559_s8 }
  0x45   : > { %v348_v31 = vmax.f32 %v347_v28, 0.0  ;;  %v375_v34 = vstv %s561_s6 }
  0x46   : > { %v376_v35 = vmul.f32 %v375_v34, %v333_v24  ;;  %v378_v36 = vstv %s562_s9 }
  0x47   : > { %v354_v37 = vmul.f32 %v353_v29, %v348_v31  ;;  %v366_v38 = vmul.f32 %v365_v30, %v348_v31  ;;  %v379_v39 = vmul.f32 %v378_v36, %v348_v31  ;;  %v382_v42 = vstv %s563_s10 }
  0x49   : > { %v355_v43 = vadd.f32 %v354_v37, %v351_v32  ;;  %v367_v44 = vadd.f32 %v366_v38, %v363_v33  ;;  %v380_v45 = vadd.f32 %v379_v39, %v376_v35 }
  0x4b   : > { %v358_v46 = vadd.f32 %v357_v40, %v355_v43  ;;  %v370_v47 = vadd.f32 %v369_v41, %v367_v44  ;;  %v383_v48 = vadd.f32 %v382_v42, %v380_v45 }
  0x4d   : > { %v359_v49 = vmax.f32 %v358_v46, 0.0  ;;  %v371_v50 = vmax.f32 %v370_v47, 0.0  ;;  %v384_v51 = vmax.f32 %v383_v48, 0.0  ;;  %393 = sbr.rel (!%p800_p5) target bundleno = 90 (0x5a), region = 98 }
  0x4f   : > { %360 = vst [vmem:[%s313_s20] sm:$0xff] %v359_v49 }
  0x50   : > { %560 = vst [vmem:[%s313_s20 + $0x8] sm:$0xff] %v371_v50 }
  0x51   : > { %564 = vst [vmem:[%s313_s20 + $0x10] sm:$0xff] %v384_v51 }
  0x56   : > { %v428_v52 = vld [vmem:[%s313_s20] sm:$0xff] }
  0x57   : > { %v430_v53 = vld [vmem:[%s313_s20 + $0x8] sm:$0xff]  ;;  %429 = vst [vmem:[%s395_s13] sm:$0xff] %v428_v52 }
  0x58   : > { %v432_v54 = vld [vmem:[%s313_s20 + $0x10] sm:$0xff]  ;;  %431 = vst [vmem:[%s395_s13 + $0x10] sm:$0xff] %v430_v53 }
  0x59   : > { %433 = vst [vmem:[%s395_s13 + $0x20] sm:$0xff] %v432_v54 }
  0x5a PF: > { %p15_p13 = scmp.ge.s32.totalorder %s784_s22, 4   ;;  %s885_s18 = smov %s725_s19 }
  0x5b   : > { %s886_s19 = smov %s794_s25  ;;  %s887_s20 = smov %s784_s22 }
  0x5c   :  { %17 = sbr.rel (!%p15_p13) target bundleno = 4 (0x4), region = 172 }
  0x61   :  { %449 = vsyncpa [#allocation3], 1 }
  0x62   :  { %451 = vsyncpa [#allocation3 + $0x1], 1 }
  0x63   :  { %452 = vsyncpa [#allocation5], 1 }
  0x64   :  { %453 = vsyncpa [#allocation8], 1 }

</bundles_post_ra>
